<compile_context>
chip_gen: v5e
topology: v5e:2x2
jax: 0.10.0
libtpu: 0.0.40
codegen_flags: <defaults>
</compile_context>

<pallas_src>
import functools
import math

import jax
import jax.numpy as jnp
from jax.experimental import pallas as pl
from jax.experimental.pallas import tpu as pltpu


# --------------------------------------------------------------------------
# Kernel
# --------------------------------------------------------------------------
def _loss_kernel(n_objs_ref,           # SMEM scalar-prefetch: [B*T] int32
                 logits_ref,           # VMEM (C, rows_tile, 128)
                 masks_ref,            # VMEM (C, rows_tile, 128)  one-hot gt
                 probs_ref,            # VMEM (C, rows_tile, 128)  object probs
                 *refs,                # [ce_pix?], ce_mean, dice, 4 scratches
                 emit_pix, hw_total, hw_padded, rows_tile):
    if emit_pix:
        (ce_pix_ref, ce_mean_ref, dice_ref,
         ce_acc, num_acc, psum_acc, gsum_acc) = refs
    else:
        (ce_mean_ref, dice_ref,
         ce_acc, num_acc, psum_acc, gsum_acc) = refs

    bt = pl.program_id(0)
    h = pl.program_id(1)
    last_h = pl.num_programs(1) - 1
    n_b = n_objs_ref[bt]                                   # scalar int32

    lg = logits_ref[...].astype(jnp.float32)               # (C, rows, 128)
    mk = masks_ref[...].astype(jnp.float32)
    pr = probs_ref[...].astype(jnp.float32)
    C = lg.shape[0]

    @pl.when(h == 0)
    def _():
        ce_acc[...] = jnp.zeros_like(ce_acc)
        num_acc[...] = jnp.zeros_like(num_acc)
        psum_acc[...] = jnp.zeros_like(psum_acc)
        gsum_acc[...] = jnp.zeros_like(gsum_acc)

    # Only the first n_objs[bt] channels take part in the CE log-sum-exp.
    # NOTE: n_objs == 0 would make every channel invalid (garbage CE) — same
    # hazard as the PyTorch reference; documented precondition n_objs >= 1.
    valid = jax.lax.broadcasted_iota(jnp.int32, (C, 1, 1), 0) < n_b
    lgm = jnp.where(valid, lg, jnp.float32(-1e30))

    # Per-pixel cross entropy.  Masks are one-hot, so the target-class logit
    # is sum(masks * logits) over channels (axis 0 -> per-vreg VALU).
    m = jnp.max(lgm, axis=0)                                        # (rows,128)
    lse = m + jnp.log(jnp.sum(jnp.exp(lgm - m[None, :, :]), axis=0))
    picked = jnp.sum(mk * lg, axis=0)                               # (rows,128)
    ce = lse - picked

    if hw_padded != hw_total:
        # Mask the zero-padded tail pixels out of the CE statistics.
        row_i = jax.lax.broadcasted_iota(jnp.int32, ce.shape, 0)
        lane_i = jax.lax.broadcasted_iota(jnp.int32, ce.shape, 1)
        gidx = (h * rows_tile + row_i) * 128 + lane_i
        pix_valid = gidx < hw_total
        ce_sum_val = jnp.where(pix_valid, ce, jnp.float32(0.0))
        ce_pix_val = jnp.where(pix_valid, ce, jnp.float32(-1e30))
    else:
        ce_sum_val = ce
        ce_pix_val = ce

    if emit_pix:                        # static flag: only in bootstrap phase
        ce_pix_ref[...] = ce_pix_val

    # Running per-lane partial sums across HW-row tiles (scratch persists
    # across the h axis); lane reduction happens once in the finalize step.
    ce_acc[...] += jnp.sum(ce_sum_val, axis=0, keepdims=True)       # (1, 128)
    num_acc[...] += jnp.sum(pr * mk, axis=1)                        # (C, 128)
    psum_acc[...] += jnp.sum(pr, axis=1)                            # (C, 128)
    gsum_acc[...] += jnp.sum(mk, axis=1)                            # (C, 128)

    @pl.when(h == last_h)
    def _():
        ce_tot = jnp.sum(ce_acc[...], axis=1, keepdims=True)        # (1, 1)
        ce_mean_ref[...] = jnp.broadcast_to(
            ce_tot * jnp.float32(1.0 / hw_total), ce_mean_ref.shape)
        num = jnp.sum(num_acc[...], axis=1, keepdims=True)          # (C, 1)
        ps = jnp.sum(psum_acc[...], axis=1, keepdims=True)
        gs = jnp.sum(gsum_acc[...], axis=1, keepdims=True)
        dice = 1.0 - (2.0 * num + 1.0) / (ps + gs + 1.0)            # (C, 1)
        dice_ref[...] = jnp.broadcast_to(dice, dice_ref.shape)


# --------------------------------------------------------------------------
# Tiling / VMEM budgets
# --------------------------------------------------------------------------
def _vmem_budgets():
    """(double-buffered block budget, vmem_limit_bytes), generation-aware."""
    cap = 64 * 1024 * 1024
    try:
        info = pltpu.get_tpu_info()
        cap = int(getattr(info, "vmem_capacity_bytes", cap))
    except Exception:
        pass
    if cap <= 64 * 1024 * 1024:
        # v7x: 64 MiB physical per TensorCore — stay well clear.
        return 20 * 1024 * 1024, 48 * 1024 * 1024
    # v5e / v6e: 128 MiB — bigger tiles amortize per-grid-step overhead.
    return 56 * 1024 * 1024, 100 * 1024 * 1024


def _choose_tiling(hw, c, in_itemsizes, emit_pix, block_budget_bytes):
    """Return (hw_padded, rows_tile).  rows_tile * 128 pixels per grid step.

    Uses the padded (sublane-rounded, double-buffered) block footprint so the
    estimate matches what Mosaic actually allocates."""
    def padded_rows(rows, itemsize):
        pack = max(1, 4 // max(1, itemsize))   # f32->1, bf16->2, i8->4
        mult = 8 * pack
        return -(-rows // mult) * mult

    def block_bytes(rows):
        b = 0
        for sz in in_itemsizes:
            b += c * padded_rows(rows, sz) * 128 * sz
        if emit_pix:
            b += padded_rows(rows, 4) * 128 * 4
        return 2 * b                            # double-buffered

    rows_full = -(-hw // 128)
    if block_bytes(rows_full) <= block_budget_bytes:
        return rows_full * 128, rows_full       # single block over all rows
    # Tile over rows: rows_tile multiple of 8; pad HW up to a tile multiple.
    rows_tile = 8
    while rows_tile + 8 < rows_full and block_bytes(rows_tile + 8) <= block_budget_bytes:
        rows_tile += 8
    hw_tile = rows_tile * 128
    hw_padded = -(-hw // hw_tile) * hw_tile
    return hw_padded, rows_tile


# --------------------------------------------------------------------------
# Wrapper
# --------------------------------------------------------------------------
def _run_kernel(logits, probs, masks, n_objs, *, emit_pix):
    """logits/probs/masks: [B, T, C, H, W]; n_objs: [B] ints."""
    B, T, C, H, W = logits.shape
    assert masks.shape[2] == C and probs.shape[2] == C
    HW = H * W
    BT = B * T

    # Free reshapes: merge (B, T) and (H, W); no transpose, no channel slice.
    lg = logits.reshape(BT, C, HW)
    mk = masks.reshape(BT, C, HW)
    pr = probs.reshape(BT, C, HW)

    block_budget, vmem_limit = _vmem_budgets()
    itemsizes = (lg.dtype.itemsize, mk.dtype.itemsize, pr.dtype.itemsize)
    hw_padded, rows_tile = _choose_tiling(HW, C, itemsizes, emit_pix,
                                          block_budget)
    if hw_padded != HW:                 # zero-pad tail (copy only when needed)
        pad = ((0, 0), (0, 0), (0, hw_padded - HW))
        lg, mk, pr = (jnp.pad(a, pad) for a in (lg, mk, pr))

    rows_total = hw_padded // 128
    n_hw = rows_total // rows_tile

    # Lane/sublane-dense layout: (BT, C, rows, 128).
    lg = lg.reshape(BT, C, rows_total, 128)
    mk = mk.reshape(BT, C, rows_total, 128)
    pr = pr.reshape(BT, C, rows_total, 128)

    n_objs_bt = jnp.repeat(n_objs.astype(jnp.int32), T)   # [B*T]

    def in_map(bt, h, n_ref):
        return (bt, 0, h, 0)

    in_specs = [
        pl.BlockSpec((None, C, rows_tile, 128), in_map),   # logits
        pl.BlockSpec((None, C, rows_tile, 128), in_map),   # masks
        pl.BlockSpec((None, C, rows_tile, 128), in_map),   # probs (incl. bg)
    ]

    out_specs, out_shapes = [], []
    if emit_pix:
        out_specs.append(pl.BlockSpec((None, rows_tile, 128),
                                      lambda bt, h, n: (bt, h, 0)))
        out_shapes.append(
            jax.ShapeDtypeStruct((BT, rows_total, 128), jnp.float32))
    # Lane-dense 128-wide slabs for the tiny per-(b, t) statistics.
    out_specs.append(pl.BlockSpec((None, 1, 128), lambda bt, h, n: (bt, 0, 0)))
    out_shapes.append(jax.ShapeDtypeStruct((BT, 1, 128), jnp.float32))
    out_specs.append(pl.BlockSpec((None, C, 128), lambda bt, h, n: (bt, 0, 0)))
    out_shapes.append(jax.ShapeDtypeStruct((BT, C, 128), jnp.float32))

    scratch_shapes = [
        pltpu.VMEM((1, 128), jnp.float32),   # running lane-partial CE sum
        pltpu.VMEM((C, 128), jnp.float32),   # running sum of probs * gt
        pltpu.VMEM((C, 128), jnp.float32),   # running sum of probs
        pltpu.VMEM((C, 128), jnp.float32),   # running sum of gt
    ]

    grid_spec = pltpu.PrefetchScalarGridSpec(
        num_scalar_prefetch=1,
        grid=(BT, n_hw),
        in_specs=in_specs,
        out_specs=out_specs,
        scratch_shapes=scratch_shapes,
    )

    n_pix = BT * hw_padded
    out_bytes = sum(math.prod(s.shape) * 4 for s in out_shapes)
    cost = pl.CostEstimate(
        flops=n_pix * (12 * C + 8),
        transcendentals=n_pix * (C + 1),
        bytes_accessed=int(lg.size * lg.dtype.itemsize +
                           mk.size * mk.dtype.itemsize +
                           pr.size * pr.dtype.itemsize) + int(out_bytes),
    )

    kernel = functools.partial(_loss_kernel, emit_pix=emit_pix, hw_total=HW,
                               hw_padded=hw_padded, rows_tile=rows_tile)
    return pl.pallas_call(
        kernel,
        out_shape=tuple(out_shapes),
        grid_spec=grid_spec,
        compiler_params=pltpu.CompilerParams(
            dimension_semantics=("parallel", "arbitrary"),
            vmem_limit_bytes=vmem_limit),
        cost_estimate=cost,
    )(n_objs_bt, lg, mk, pr)


def loss_forward(logits, probs, masks, n_objs, step=0,
                 start_warm=20000, end_warm=70000, top_p=0.15):
    """Mirror of Loss.forward (PyTorch).  `step` must be a static Python int.
    Returns (loss, loss_stats) with loss_stats as JAX scalars."""
    B, T, C, H, W = logits.shape
    HW = H * W
    emit_pix = step >= start_warm       # ce_pix only needed for bootstrapping

    outs = _run_kernel(logits, probs, masks, n_objs, emit_pix=emit_pix)
    if emit_pix:
        ce_pix, ce_mean_slab, dice_slab = outs
    else:
        ce_mean_slab, dice_slab = outs

    if not emit_pix:
        ce_loss = jnp.mean(ce_mean_slab[:, 0, 0])
    else:
        if step > end_warm:
            this_p = top_p
        else:
            this_p = top_p + (1.0 - top_p) * (
                (end_warm - step) / (end_warm - start_warm))
        k = min(HW, max(1, int(HW * this_p)))
        BT = ce_pix.shape[0]
        # TODO(synk): exact top-k matches the PyTorch reference; for very
        # large HW this XLA sort dominates — switch to jax.lax.approx_max_k or
        # an in-kernel CE-histogram threshold select to drop ce_pix entirely.
        topv = jax.lax.top_k(ce_pix.reshape(BT, -1), k)[0]
        ce_loss = jnp.mean(topv)

    dice = jnp.mean(dice_slab[:, 1:, 0])                   # drop background ch
    loss = ce_loss + dice
    return loss, {"cls_loss": ce_loss, "iou_loss": dice}


# --------------------------------------------------------------------------
# Reference (plain JAX) mirroring the PyTorch module
# --------------------------------------------------------------------------
def _ref_loss(logits, probs, masks, n_objs, step,
              start_warm=20000, end_warm=70000, top_p=0.15):
    logits = logits.astype(jnp.float32)
    probs = probs.astype(jnp.float32)
    masks_f = masks.astype(jnp.float32)
    B, T, C, H, W = logits.shape
    HW = H * W
    O = C - 1
    cls_gt = jnp.argmax(masks_f, axis=2)                   # [B, T, H, W]
    ce_vals, dice_vals = [], []
    for ti in range(T):
        for bi in range(B):
            n = int(n_objs[bi])
            lg = logits[bi, ti, :n].reshape(n, HW)
            tg = cls_gt[bi, ti].reshape(HW)
            lse = jax.nn.logsumexp(lg, axis=0)
            picked = jnp.take_along_axis(lg, tg[None, :], axis=0)[0]
            raw = lse - picked
            if step < start_warm:
                ce_vals.append(jnp.mean(raw))
            else:
                if step > end_warm:
                    this_p = top_p
                else:
                    this_p = top_p + (1.0 - top_p) * (
                        (end_warm - step) / (end_warm - start_warm))
                k = min(HW, max(1, int(HW * this_p)))
                ce_vals.append(jnp.mean(jax.lax.top_k(raw, k)[0]))
        im = probs[:, ti, 1:].reshape(B, O, HW)
        tg = cls_gt[:, ti].reshape(B, HW)
        per = []
        for i in range(O):
            m = im[:, i]
            g = (tg == i + 1).astype(jnp.float32)
            numer = 2.0 * jnp.sum(m * g, axis=-1)
            denom = jnp.sum(m, axis=-1) + jnp.sum(g, axis=-1)
            per.append(1.0 - (numer + 1.0) / (denom + 1.0))
        dice_vals.append(jnp.mean(jnp.concatenate(per)))
    ce = jnp.mean(jnp.stack(ce_vals))
    dc = jnp.mean(jnp.stack(dice_vals))
    return ce + dc, ce, dc


# --------------------------------------------------------------------------
# Self-test
# --------------------------------------------------------------------------
if __name__ == "__main__":
    B, T, C, H, W = 2, 3, 4, 16, 16            # C = 1 background + 3 objects
    key = jax.random.PRNGKey(0)
    k1, k2, k3 = jax.random.split(key, 3)

    logits = jax.random.normal(k1, (B, T, C, H, W), jnp.float32)
    probs = jax.nn.softmax(
        jax.random.normal(k2, (B, T, C, H, W), jnp.float32), axis=2)
    n_objs = jnp.array([C, C - 1], dtype=jnp.int32)

    # One-hot ground-truth masks (class ids < n_objs[b]); bf16 halves the mask
    # DMA traffic and is exact for {0, 1}.
    cls_rows = []
    for bi in range(B):
        kb = jax.random.fold_in(k3, bi)
        cls_rows.append(jax.random.randint(kb, (T, H, W), 0, int(n_objs[bi])))
    cls = jnp.stack(cls_rows, axis=0)                      # [B, T, H, W]
    masks = jnp.transpose(jax.nn.one_hot(cls, C, dtype=jnp.bfloat16),
                          (0, 1, 4, 2, 3))                 # [B, T, C, H, W]

    # step=0: warm-up (mean CE, no ce_pix output)
    # step=30000: bootstrapped top-k CE (ce_pix output + lax.top_k)
    # step=80000: past end_warm (this_p = top_p)
    for step in (0, 30000, 80000):
        loss, stats = loss_forward(logits, probs, masks, n_objs, step=step)
        loss = jax.block_until_ready(loss)
        ref_total, ref_ce, ref_dice = _ref_loss(logits, probs, masks,
                                                n_objs, step)
        assert abs(float(loss) - float(ref_total)) < 1e-4, (
            step, float(loss), float(ref_total))
        assert abs(float(stats["cls_loss"]) - float(ref_ce)) < 1e-4, step
        assert abs(float(stats["iou_loss"]) - float(ref_dice)) < 1e-4, step

    print("KERNEL_OK")
</pallas_src>

<mosaic_0001>
module attributes {stable_mosaic.version = 11 : i64} {
  func.func @_loss_kernel(%arg0: i32, %arg1: i32, %arg2: memref<6xi32, #tpu.memory_space<smem>>, %arg3: memref<1x4x2x128xf32, #tpu.memory_space<vmem>>, %arg4: memref<1x4x2x128xbf16, #tpu.memory_space<vmem>>, %arg5: memref<1x4x2x128xf32, #tpu.memory_space<vmem>>, %arg6: memref<1x1x128xf32, #tpu.memory_space<vmem>>, %arg7: memref<1x4x128xf32, #tpu.memory_space<vmem>>, %arg8: memref<1x128xf32, #tpu.memory_space<vmem>>, %arg9: memref<4x128xf32, #tpu.memory_space<vmem>>, %arg10: memref<4x128xf32, #tpu.memory_space<vmem>>, %arg11: memref<4x128xf32, #tpu.memory_space<vmem>>) attributes {dimension_semantics = [#tpu.dimension_semantics<parallel>, #tpu.dimension_semantics<arbitrary>], iteration_bounds = array<i64: 6, 1>, scalar_prefetch = 1 : i64, scratch_operands = 4 : i64, tpu.core_type = #tpu.core_type<tc>, window_params = [{transform_indices = @transform_0, window_bounds = array<i64: 1, 4, 2, 128>}, {transform_indices = @transform_1, window_bounds = array<i64: 1, 4, 2, 128>}, {transform_indices = @transform_2, window_bounds = array<i64: 1, 4, 2, 128>}, {transform_indices = @transform_3, window_bounds = array<i64: 1, 1, 128>}, {transform_indices = @transform_4, window_bounds = array<i64: 1, 4, 128>}]} {
    %0 = arith.index_cast %arg0 : i32 to index
    %1 = memref.load %arg2[%0] : memref<6xi32, #tpu.memory_space<smem>>
    %c0 = arith.constant 0 : index
    %c0_0 = arith.constant 0 : index
    %c0_1 = arith.constant 0 : index
    %c0_2 = arith.constant 0 : index
    %2 = vector.load %arg3[%c0, %c0_0, %c0_1, %c0_2] : memref<1x4x2x128xf32, #tpu.memory_space<vmem>>, vector<1x4x2x128xf32>
    %3 = vector.shape_cast %2 : vector<1x4x2x128xf32> to vector<4x2x128xf32>
    %c0_3 = arith.constant 0 : index
    %c0_4 = arith.constant 0 : index
    %c0_5 = arith.constant 0 : index
    %c0_6 = arith.constant 0 : index
    %4 = vector.load %arg4[%c0_3, %c0_4, %c0_5, %c0_6] : memref<1x4x2x128xbf16, #tpu.memory_space<vmem>>, vector<1x4x2x128xbf16>
    %5 = vector.shape_cast %4 : vector<1x4x2x128xbf16> to vector<4x2x128xbf16>
    %6 = arith.extf %5 : vector<4x2x128xbf16> to vector<4x2x128xf32>
    %c0_7 = arith.constant 0 : index
    %c0_8 = arith.constant 0 : index
    %c0_9 = arith.constant 0 : index
    %c0_10 = arith.constant 0 : index
    %7 = vector.load %arg5[%c0_7, %c0_8, %c0_9, %c0_10] : memref<1x4x2x128xf32, #tpu.memory_space<vmem>>, vector<1x4x2x128xf32>
    %8 = vector.shape_cast %7 : vector<1x4x2x128xf32> to vector<4x2x128xf32>
    %c0_i32 = arith.constant 0 : i32
    %9 = arith.cmpi eq, %arg1, %c0_i32 : i32
    %10 = arith.extui %9 : i1 to i32
    %c0_i32_11 = arith.constant 0 : i32
    %11 = arith.cmpi ne, %10, %c0_i32_11 : i32
    scf.if %11 {
      %cst_37 = arith.constant 0.000000e+00 : f32
      %51 = vector.broadcast %cst_37 : f32 to vector<1x128xf32>
      %c0_38 = arith.constant 0 : index
      %c0_39 = arith.constant 0 : index
      %52 = vector.load %arg8[%c0_38, %c0_39] : memref<1x128xf32, #tpu.memory_space<vmem>>, vector<1x128xf32>
      tpu.vector_store %arg8[%c0_38, %c0_39], %51 {strides = array<i32>} : memref<1x128xf32, #tpu.memory_space<vmem>>, vector<1x128xf32>,
      %cst_40 = arith.constant 0.000000e+00 : f32
      %53 = vector.broadcast %cst_40 : f32 to vector<4x128xf32>
      %c0_41 = arith.constant 0 : index
      %c0_42 = arith.constant 0 : index
      %54 = vector.load %arg9[%c0_41, %c0_42] : memref<4x128xf32, #tpu.memory_space<vmem>>, vector<4x128xf32>
      tpu.vector_store %arg9[%c0_41, %c0_42], %53 {strides = array<i32>} : memref<4x128xf32, #tpu.memory_space<vmem>>, vector<4x128xf32>,
      %cst_43 = arith.constant 0.000000e+00 : f32
      %55 = vector.broadcast %cst_43 : f32 to vector<4x128xf32>
      %c0_44 = arith.constant 0 : index
      %c0_45 = arith.constant 0 : index
      %56 = vector.load %arg10[%c0_44, %c0_45] : memref<4x128xf32, #tpu.memory_space<vmem>>, vector<4x128xf32>
      tpu.vector_store %arg10[%c0_44, %c0_45], %55 {strides = array<i32>} : memref<4x128xf32, #tpu.memory_space<vmem>>, vector<4x128xf32>,
      %cst_46 = arith.constant 0.000000e+00 : f32
      %57 = vector.broadcast %cst_46 : f32 to vector<4x128xf32>
      %c0_47 = arith.constant 0 : index
      %c0_48 = arith.constant 0 : index
      %58 = vector.load %arg11[%c0_47, %c0_48] : memref<4x128xf32, #tpu.memory_space<vmem>>, vector<4x128xf32>
      tpu.vector_store %arg11[%c0_47, %c0_48], %57 {strides = array<i32>} : memref<4x128xf32, #tpu.memory_space<vmem>>, vector<4x128xf32>,
    } else {
    }
    %12 = tpu.iota {dimensions = array<i32: 0>} : vector<4x1x1xi32>
    %13 = vector.broadcast %1 : i32 to vector<4x1x1xi32>
    %14 = arith.cmpi slt, %12, %13 : vector<4x1x1xi32>
    %cst = arith.constant -1.000000e+30 : f32
    %15 = vector.shape_cast %14 : vector<4x1x1xi1> to vector<4x1x1xi1>
    %16 = vector.broadcast %15 : vector<4x1x1xi1> to vector<4x2x128xi1>
    %17 = vector.broadcast %cst : f32 to vector<4x2x128xf32>
    %18 = arith.select %16, %3, %17 : vector<4x2x128xi1>, vector<4x2x128xf32>
    %cst_12 = arith.constant dense<0xFF800000> : vector<2x128xf32>
    %19 = vector.multi_reduction <maximumf>, %18, %cst_12 [0] : vector<4x2x128xf32> to vector<2x128xf32>
    %20 = vector.shape_cast %19 : vector<2x128xf32> to vector<1x2x128xf32>
    %21 = vector.broadcast %20 : vector<1x2x128xf32> to vector<4x2x128xf32>
    %22 = arith.subf %18, %21 : vector<4x2x128xf32>
    %23 = math.exp %22 : vector<4x2x128xf32>
    %cst_13 = arith.constant dense<0.000000e+00> : vector<2x128xf32>
    %24 = vector.multi_reduction <add>, %23, %cst_13 [0] : vector<4x2x128xf32> to vector<2x128xf32>
    %25 = math.log %24 : vector<2x128xf32>
    %26 = arith.addf %19, %25 : vector<2x128xf32>
    %27 = arith.mulf %6, %3 : vector<4x2x128xf32>
    %cst_14 = arith.constant dense<0.000000e+00> : vector<2x128xf32>
    %28 = vector.multi_reduction <add>, %27, %cst_14 [0] : vector<4x2x128xf32> to vector<2x128xf32>
    %29 = arith.subf %26, %28 : vector<2x128xf32>
    %c0_15 = arith.constant 0 : index
    %c0_16 = arith.constant 0 : index
    %30 = vector.load %arg8[%c0_15, %c0_16] : memref<1x128xf32, #tpu.memory_space<vmem>>, vector<1x128xf32>
    %cst_17 = arith.constant dense<0.000000e+00> : vector<128xf32>
    %31 = vector.multi_reduction <add>, %29, %cst_17 [0] : vector<2x128xf32> to vector<128xf32>
    %32 = vector.shape_cast %31 : vector<128xf32> to vector<1x128xf32>
    %33 = arith.addf %30, %32 : vector<1x128xf32>
    %c0_18 = arith.constant 0 : index
    %c0_19 = arith.constant 0 : index
    %34 = vector.load %arg8[%c0_18, %c0_19] : memref<1x128xf32, #tpu.memory_space<vmem>>, vector<1x128xf32>
    tpu.vector_store %arg8[%c0_18, %c0_19], %33 {strides = array<i32>} : memref<1x128xf32, #tpu.memory_space<vmem>>, vector<1x128xf32>,
    %c0_20 = arith.constant 0 : index
    %c0_21 = arith.constant 0 : index
    %35 = vector.load %arg9[%c0_20, %c0_21] : memref<4x128xf32, #tpu.memory_space<vmem>>, vector<4x128xf32>
    %36 = arith.mulf %8, %6 : vector<4x2x128xf32>
    %cst_22 = arith.constant dense<0.000000e+00> : vector<4x128xf32>
    %37 = vector.multi_reduction <add>, %36, %cst_22 [1] : vector<4x2x128xf32> to vector<4x128xf32>
    %38 = arith.addf %35, %37 : vector<4x128xf32>
    %c0_23 = arith.constant 0 : index
    %c0_24 = arith.constant 0 : index
    %39 = vector.load %arg9[%c0_23, %c0_24] : memref<4x128xf32, #tpu.memory_space<vmem>>, vector<4x128xf32>
    tpu.vector_store %arg9[%c0_23, %c0_24], %38 {strides = array<i32>} : memref<4x128xf32, #tpu.memory_space<vmem>>, vector<4x128xf32>,
    %c0_25 = arith.constant 0 : index
    %c0_26 = arith.constant 0 : index
    %40 = vector.load %arg10[%c0_25, %c0_26] : memref<4x128xf32, #tpu.memory_space<vmem>>, vector<4x128xf32>
    %cst_27 = arith.constant dense<0.000000e+00> : vector<4x128xf32>
    %41 = vector.multi_reduction <add>, %8, %cst_27 [1] : vector<4x2x128xf32> to vector<4x128xf32>
    %42 = arith.addf %40, %41 : vector<4x128xf32>
    %c0_28 = arith.constant 0 : index
    %c0_29 = arith.constant 0 : index
    %43 = vector.load %arg10[%c0_28, %c0_29] : memref<4x128xf32, #tpu.memory_space<vmem>>, vector<4x128xf32>
    tpu.vector_store %arg10[%c0_28, %c0_29], %42 {strides = array<i32>} : memref<4x128xf32, #tpu.memory_space<vmem>>, vector<4x128xf32>,
    %c0_30 = arith.constant 0 : index
    %c0_31 = arith.constant 0 : index
    %44 = vector.load %arg11[%c0_30, %c0_31] : memref<4x128xf32, #tpu.memory_space<vmem>>, vector<4x128xf32>
    %cst_32 = arith.constant dense<0.000000e+00> : vector<4x128xf32>
    %45 = vector.multi_reduction <add>, %6, %cst_32 [1] : vector<4x2x128xf32> to vector<4x128xf32>
    %46 = arith.addf %44, %45 : vector<4x128xf32>
    %c0_33 = arith.constant 0 : index
    %c0_34 = arith.constant 0 : index
    %47 = vector.load %arg11[%c0_33, %c0_34] : memref<4x128xf32, #tpu.memory_space<vmem>>, vector<4x128xf32>
    tpu.vector_store %arg11[%c0_33, %c0_34], %46 {strides = array<i32>} : memref<4x128xf32, #tpu.memory_space<vmem>>, vector<4x128xf32>,
    %c0_i32_35 = arith.constant 0 : i32
    %48 = arith.cmpi eq, %arg1, %c0_i32_35 : i32
    %49 = arith.extui %48 : i1 to i32
    %c0_i32_36 = arith.constant 0 : i32
    %50 = arith.cmpi ne, %49, %c0_i32_36 : i32
    scf.if %50 {
      %c0_37 = arith.constant 0 : index
      %c0_38 = arith.constant 0 : index
      %51 = vector.load %arg8[%c0_37, %c0_38] : memref<1x128xf32, #tpu.memory_space<vmem>>, vector<1x128xf32>
      %cst_39 = arith.constant dense<0.000000e+00> : vector<1xf32>
      %52 = vector.multi_reduction <add>, %51, %cst_39 [1] : vector<1x128xf32> to vector<1xf32>
      %53 = vector.shape_cast %52 : vector<1xf32> to vector<1x1xf32>
      %cst_40 = arith.constant 3.906250e-03 : f32
      %54 = vector.broadcast %cst_40 : f32 to vector<1x1xf32>
      %55 = arith.mulf %53, %54 : vector<1x1xf32>
      %56 = vector.shape_cast %55 : vector<1x1xf32> to vector<1x1xf32>
      %57 = vector.broadcast %56 : vector<1x1xf32> to vector<1x128xf32>
      %c0_41 = arith.constant 0 : index
      %c0_42 = arith.constant 0 : index
      %c0_43 = arith.constant 0 : index
      %58 = vector.load %arg6[%c0_41, %c0_42, %c0_43] : memref<1x1x128xf32, #tpu.memory_space<vmem>>, vector<1x1x128xf32>
      %59 = vector.shape_cast %58 : vector<1x1x128xf32> to vector<1x128xf32>
      %60 = vector.shape_cast %57 : vector<1x128xf32> to vector<1x1x128xf32>
      tpu.vector_store %arg6[%c0_41, %c0_42, %c0_43], %60 {strides = array<i32>} : memref<1x1x128xf32, #tpu.memory_space<vmem>>, vector<1x1x128xf32>,
      %c0_44 = arith.constant 0 : index
      %c0_45 = arith.constant 0 : index
      %61 = vector.load %arg9[%c0_44, %c0_45] : memref<4x128xf32, #tpu.memory_space<vmem>>, vector<4x128xf32>
      %cst_46 = arith.constant dense<0.000000e+00> : vector<4xf32>
      %62 = vector.multi_reduction <add>, %61, %cst_46 [1] : vector<4x128xf32> to vector<4xf32>
      %63 = vector.shape_cast %62 : vector<4xf32> to vector<4x1xf32>
      %c0_47 = arith.constant 0 : index
      %c0_48 = arith.constant 0 : index
      %64 = vector.load %arg10[%c0_47, %c0_48] : memref<4x128xf32, #tpu.memory_space<vmem>>, vector<4x128xf32>
      %cst_49 = arith.constant dense<0.000000e+00> : vector<4xf32>
      %65 = vector.multi_reduction <add>, %64, %cst_49 [1] : vector<4x128xf32> to vector<4xf32>
      %66 = vector.shape_cast %65 : vector<4xf32> to vector<4x1xf32>
      %c0_50 = arith.constant 0 : index
      %c0_51 = arith.constant 0 : index
      %67 = vector.load %arg11[%c0_50, %c0_51] : memref<4x128xf32, #tpu.memory_space<vmem>>, vector<4x128xf32>
      %cst_52 = arith.constant dense<0.000000e+00> : vector<4xf32>
      %68 = vector.multi_reduction <add>, %67, %cst_52 [1] : vector<4x128xf32> to vector<4xf32>
      %69 = vector.shape_cast %68 : vector<4xf32> to vector<4x1xf32>
      %cst_53 = arith.constant 2.000000e+00 : f32
      %70 = vector.broadcast %cst_53 : f32 to vector<4x1xf32>
      %71 = arith.mulf %70, %63 : vector<4x1xf32>
      %cst_54 = arith.constant 1.000000e+00 : f32
      %72 = vector.broadcast %cst_54 : f32 to vector<4x1xf32>
      %73 = arith.addf %71, %72 : vector<4x1xf32>
      %74 = arith.addf %66, %69 : vector<4x1xf32>
      %cst_55 = arith.constant 1.000000e+00 : f32
      %75 = vector.broadcast %cst_55 : f32 to vector<4x1xf32>
      %76 = arith.addf %74, %75 : vector<4x1xf32>
      %77 = arith.divf %73, %76 : vector<4x1xf32>
      %cst_56 = arith.constant 1.000000e+00 : f32
      %78 = vector.broadcast %cst_56 : f32 to vector<4x1xf32>
      %79 = arith.subf %78, %77 : vector<4x1xf32>
      %80 = vector.shape_cast %79 : vector<4x1xf32> to vector<4x1xf32>
      %81 = vector.broadcast %80 : vector<4x1xf32> to vector<4x128xf32>
      %c0_57 = arith.constant 0 : index
      %c0_58 = arith.constant 0 : index
      %c0_59 = arith.constant 0 : index
      %82 = vector.load %arg7[%c0_57, %c0_58, %c0_59] : memref<1x4x128xf32, #tpu.memory_space<vmem>>, vector<1x4x128xf32>
      %83 = vector.shape_cast %82 : vector<1x4x128xf32> to vector<4x128xf32>
      %84 = vector.shape_cast %81 : vector<4x128xf32> to vector<1x4x128xf32>
      tpu.vector_store %arg7[%c0_57, %c0_58, %c0_59], %84 {strides = array<i32>} : memref<1x4x128xf32, #tpu.memory_space<vmem>>, vector<1x4x128xf32>,
    } else {
    }
    return
  }
  func.func @transform_0(%arg0: i32, %arg1: i32, %arg2: memref<6xi32, #tpu.memory_space<smem>>) -> (i32, i32, i32, i32) {
    %c0_i32 = arith.constant 0 : i32
    %c0_i32_0 = arith.constant 0 : i32
    %c0_i32_1 = arith.constant 0 : i32
    return %arg0, %c0_i32, %arg1, %c0_i32_0 : i32, i32, i32, i32
  }
  func.func @transform_1(%arg0: i32, %arg1: i32, %arg2: memref<6xi32, #tpu.memory_space<smem>>) -> (i32, i32, i32, i32) {
    %c0_i32 = arith.constant 0 : i32
    %c0_i32_0 = arith.constant 0 : i32
    %c0_i32_1 = arith.constant 0 : i32
    return %arg0, %c0_i32, %arg1, %c0_i32_0 : i32, i32, i32, i32
  }
  func.func @transform_2(%arg0: i32, %arg1: i32, %arg2: memref<6xi32, #tpu.memory_space<smem>>) -> (i32, i32, i32, i32) {
    %c0_i32 = arith.constant 0 : i32
    %c0_i32_0 = arith.constant 0 : i32
    %c0_i32_1 = arith.constant 0 : i32
    return %arg0, %c0_i32, %arg1, %c0_i32_0 : i32, i32, i32, i32
  }
  func.func @transform_3(%arg0: i32, %arg1: i32, %arg2: memref<6xi32, #tpu.memory_space<smem>>) -> (i32, i32, i32) {
    %c0_i32 = arith.constant 0 : i32
    %c0_i32_0 = arith.constant 0 : i32
    %c0_i32_1 = arith.constant 0 : i32
    return %arg0, %c0_i32, %c0_i32_0 : i32, i32, i32
  }
  func.func @transform_4(%arg0: i32, %arg1: i32, %arg2: memref<6xi32, #tpu.memory_space<smem>>) -> (i32, i32, i32) {
    %c0_i32 = arith.constant 0 : i32
    %c0_i32_0 = arith.constant 0 : i32
    %c0_i32_1 = arith.constant 0 : i32
    return %arg0, %c0_i32, %c0_i32_0 : i32, i32, i32
  }
}

</mosaic_0001>

<bundles_post_ra>
// kernel: tpu_custom_call.1
= control target key start
LH: loop header
LB: loop body
LE: loop exit
PB: predicated region body
PF: predicated region fallthrough
CT: control target
= control target key end

     0   :  { %s1129_s21 = smov [#allocation7]   ;;  %s1461_s0 = inlined_call_operand.hbm [shape: s32[6], index: 0, kind: input, shape index: {}]   ;;  %s1462_s1 = inlined_call_operand.hbm [shape: f32[6,4,2,128], index: 1, kind: input, shape index: {}]   ;;  %s1463_s2 = inlined_call_operand.hbm [shape: bf16[6,4,2,128], index: 2, kind: input, shape index: {}]   ;;  %s1464_s3 = inlined_call_operand.hbm [shape: f32[6,4,2,128], index: 3, kind: input, shape index: {}]   ;;  %s1465_s4 = inlined_call_operand.hbm [shape: f32[6,1,128], index: 4, kind: output, shape index: {0}]   ;;  %s1466_s5 = inlined_call_operand.hbm [shape: f32[6,4,128], index: 5, kind: output, shape index: {1}]  }
   0x1   :  { %1471 = sst [smem:[#allocation27_spill]] %s1463_s2  ;;  %s12_s20 = sshll.u32 %s1461_s0, 4  ;;  %s13_s20 = int_to_ptr.hbm [resolvable:$true] %s12_s20 }
   0x2   :  { %15 = dma.hbm_to_smem %s13_s20, 16, %s1129_s21, [#allocation6] }
   0x3   :  { %1087 = dma.done.wait [#allocation6], 16 }
   0x4   :  { %1088 = vsyncadd [#allocation6], 4294967280 }
   0x5   :  { %18 = sfence }
   0x6   :  { %19 = vsyncpa [#allocation9], 0 }
   0x7   :  { %21 = vsyncpa [#allocation9 + $0x1], 0 }
   0x8   :  { %22 = vsyncpa [#allocation12], 0 }
   0x9   :  { %24 = vsyncpa [#allocation12 + $0x1], 0 }
   0xa   :  { %25 = vsyncpa [#allocation10], 0 }
   0xb   :  { %27 = vsyncpa [#allocation10 + $0x1], 0 }
   0xc   :  { %28 = vsyncpa [#allocation16], 0 }
   0xd   :  { %30 = vsyncpa [#allocation16 + $0x1], 0  ;;  %s1168_s22 = smov 0   ;;  %s1170_s23 = smov 0  }
   0xe   :  { %s1172_s24 = smov 0   ;;  %s1174_s0 = smov 0  }
   0xf   :  { %s1176_s25 = smov 0   ;;  %s1178_s26 = smov 0  }
  0x10 LB: > { %1472 = sst [smem:[#allocation22_spill]] %s1115_s24  ;;  %s1199_s27 = sadd.s32 4294967295, %s1127_s26   ;;  %s1127_s26 = sphi %s1178_s26, %s36_s26   ;;  %s1123_s25 = sphi %s1176_s25, %s1488_s25   ;;  %s1119_s0 = sphi %s1174_s0, %s1487_s0   ;;  %s1115_s24 = sphi %s1172_s24, %s1486_s24   ;;  %s1111_s23 = sphi %s1170_s23, %s1490_s23   ;;  %s1107_s22 = sphi %s1168_s22, %s1489_s22  }
  0x11   : > { %1473 = sst [smem:[#allocation23_spill]] %s1123_s25  ;;  %s788_s28 = sadd.s32 4294967294, %s1127_s26  }
  0x12   : > { %s48_s29 = sadd.s32 1, %s1123_s25  ;;  %s57_s30 = sadd.s32 1, %s1115_s24 }
  0x13   : > { %p50_p0 = scmp.ge.s32.totalorder %s48_s29, 6  ;;  %p64_p1 = scmp.ne.s32.totalorder %s1115_s24, %s1111_s23 }
  0x14   : > { %p65_p2 = scmp.eq.s32.totalorder %s1127_s26, 0  ;;  %p70_p3 = scmp.ne.s32.totalorder %s1111_s23, %s1107_s22 }
  0x15   : > { %s1492_s29 = smov (%p50_p0, %s48_s29), 0  ;;  %p71_p5 = scmp.eq.s32.totalorder %s1199_s27, 0 }
  0x16   : > { %1474 = sst [smem:[#allocation24_spill]] %s1492_s29  ;;  %p1211_p4 = por %p65_p2, %p64_p1 }
  0x17   : > { %s52_s7 = ssub.s32 %s1123_s25, %s1492_s29  ;;  %p150_p6 = scmp.eq.s32.totalorder %s1199_s27, 5 }
  0x18   : > { %p55_p7 = scmp.eq.s32.totalorder %s52_s7, 0  ;;  %p1219_p8 = por %p71_p5, %p70_p3 }
  0x19   : > { %p1223_p9 = por %p150_p6, %p64_p1  ;;  %p156_p10 = scmp.eq.s32.totalorder %s788_s28, 5 }
  0x1a   : > { %s1228_s10 = scalar_select %p55_p7, %s1115_s24, %s57_s30  }
  0x1b   : > { %p1230_p11 = por %p156_p10, %p70_p3  ;;  %p837_p12 = scmp.lt.s32.totalorder %s1127_s26, 6 }
  0x1c   : > { %1478 = sst [smem:[#allocation25_spill]] %s1228_s10  ;;  %s1236_s12 = sand.u32 1, %s1115_s24  }
  0x1d   : > { %s1479_s11 = scalar_select %p1230_p11, 1, 0 }
  0x1e   : > { %s225_s13 = sand.u32 1, %s1127_s26   ;;  %s794_s14 = sshll.u32 %s1236_s12, 2 }
  0x1f   : > { %1480 = sst [smem:[#allocation26_spill]] %s1479_s11  ;;  %p1242_p13 = pnand %p837_p12, %p1211_p4 }
  0x20   : > { %s795_s16 = sshll.u32 %s1123_s25, 2  ;;  %s1482_s2 = sld [smem:[#allocation27_spill]] }
  0x21   : > { %s229_s21 = scalar_lea.vmem [#allocation11], %s794_s14  ;;  %s1250_s30 = scalar_lea.sflag [#allocation12], %s225_s13 }
  0x22   : > { %s237_s28 = sshll.u32 %s229_s21, 4  ;;  %s1130_s6 = smov 16   ;;  %s238_s28 = int_to_ptr.vmem [resolvable:$true] %s237_s28 }
  0x23   : > { %s1131_s7 = smov 1   ;;  %p799_p0 = scmp.ge.s32.totalorder %s1127_s26, 1 }
  0x24   : > { %p268_p1 = scmp.lt.s32.totalorder %s1127_s26, 7  ;;  %s808_s14 = sshll.u32 %s1123_s25, 3 }
  0x25   : > { %s257_s25 = scalar_lea.hbm %s1464_s3, %s808_s14 }
  0x26   : > { %s234_s19 = scalar_lea.hbm %s1482_s2, %s795_s16  ;;  %p1257_p2 = pnand %p799_p0, %p268_p1 }
  0x27   : > { %s235_s20 = sshll.u32 %s234_s19, 4  ;;  %s791_s16 = sshll.u32 %s1236_s12, 3  ;;  %s236_s20 = int_to_ptr.hbm [resolvable:$true] %s235_s20 }
  0x28   : > { %826 = dma.hbm_to_vmem [thread:$0]  (!%p1242_p13), %s236_s20, 64, %s238_s28, %s1250_s30, %s1130_s6, %s1130_s6, %s1131_s7  }
  0x29   : > { %s212_s19 = scalar_lea.hbm %s1462_s1, %s808_s14  ;;  %s206_s21 = scalar_lea.vmem [#allocation8], %s791_s16 }
  0x2a   : > { %s213_s13 = sshll.u32 %s212_s19, 4  ;;  %s215_s2 = sshll.u32 %s206_s21, 4  ;;  %s214_s13 = int_to_ptr.hbm [resolvable:$true] %s213_s13  ;;  %s216_s2 = int_to_ptr.vmem [resolvable:$true] %s215_s2 }
  0x2b   : > { %s203_s20 = scalar_lea.sflag [#allocation9], %s1236_s12  ;;  %s1132_s28 = smov 32  }
  0x2c   : > { %s1133_s6 = smov 2   ;;  %s258_s24 = sshll.u32 %s257_s25, 4  ;;  %s259_s24 = int_to_ptr.hbm [resolvable:$true] %s258_s24 }
  0x2d   : > { %823 = dma.hbm_to_vmem [thread:$0]  (!%p1242_p13), %s214_s13, 128, %s216_s2, %s203_s20, %s1132_s28, %s1132_s28, %s1133_s6  }
  0x2e   : > { %s251_s11 = scalar_lea.vmem [#allocation13], %s791_s16  ;;  %272 = sbr.rel (%p1257_p2) target bundleno = 269 (0x10d), region = 32 }
  0x2f   : > { %s260_s17 = sshll.u32 %s251_s11, 4  ;;  %s1278_s12 = sand.u32 (!%p1257_p2), 1, %s1111_s23   ;;  %s261_s17 = int_to_ptr.vmem [resolvable:$true] %s260_s17 }
  0x30   : > { %829 = dma.hbm_to_vmem [thread:$0]  (!%p1242_p13), %s259_s24, 128, %s261_s17, %s1250_s30, %s1132_s28, %s1132_s28, %s1133_s6  }
  0x31   : > { %s800_s2 = sshll.u32 (!%p1257_p2), %s1278_s12, 3  ;;  %s275_s18 = scalar_lea.sflag (!%p1257_p2), [#allocation9], %s1278_s12 }
  0x32   : > { %s1282_s10 = scalar_lea.vmem (!%p1257_p2), [#allocation8], %s800_s2 }
  0x33   : > { %1090 = dma.done.wait (%p1219_p8), %s275_s18, 128  }
  0x34   : > { %1092 = vsyncadd (%p1219_p8), %s275_s18, 4294967168  ;;  %s284_s24 = sand.u32 1, %s1199_s27   ;;  %s801_s25 = sshll.u32 %s1278_s12, 2 }
  0x35   : > { %s285_s29 = scalar_lea.sflag [#allocation12], %s284_s24  ;;  %s1292_s11 = scalar_lea.vmem [#allocation11], %s801_s25 }
  0x36   : > { %1094 = dma.done.wait (%p1219_p8), %s285_s29, 192  }
  0x37   : > { %1096 = vsyncadd (%p1219_p8), %s285_s29, 4294967104  ;;  %v1134_v0 = vmov 0.0   ;;  %s338_s15 = sld [smem:[#allocation7 + %s1119_s0]]  ;;  %vm380_vm0 = vcmask 1041408   ;;  %s298_s27 = scalar_lea.vmem [#allocation13], %s800_s2  ;;  %vm469_vm1 = vcmask 1041409  }
  0x38   : > { %361 = vst [vmem:[#allocation4] sm:$0xf] %v1134_v0  ;;  %v1299_v1 = vld [vmem:[%s298_s27] sm:$0x3]  ;;  %v1301_v2 = vld [vmem:[%s298_s27 + $0x2] sm:$0x3] }
  0x39   : > { %359 = vst [vmem:[#allocation2] sm:$0x1] %v1134_v0  ;;  %v1303_v3 = vld [vmem:[%s298_s27 + $0x4] sm:$0x3]  ;;  %v1305_v4 = vld [vmem:[%s298_s27 + $0x6] sm:$0x3] }
  0x3a   : > { %360 = vst [vmem:[#allocation3] sm:$0xf] %v1134_v0  ;;  %v479_v5 = vsel %vm380_vm0, %v1299_v1, 0.0  ;;  %v486_v6 = vsel %vm380_vm0, %v1301_v2, 0.0  ;;  %v493_v9 = vsel %vm380_vm0, %v1303_v3, 0.0  ;;  %v500_v10 = vsel %vm380_vm0, %v1305_v4, 0.0 }
  0x3b   : > { %362 = vst [vmem:[#allocation5] sm:$0xf] %v1134_v0  ;;  %v480_v7 = vrot.slane %v479_v5, 4  ;;  %v487_v8 = vrot.slane %v486_v6, 4  ;;  %v343_v11 = vld [vmem:[%s1292_s11] sm:$0x1] }
  0x3c   : > { %v494_v12 = vrot.slane %v493_v9, 4  ;;  %v501_v13 = vrot.slane %v500_v10, 4  ;;  %v344_v14 = vld [vmem:[%s1292_s11 + $0x1] sm:$0x1]  ;;  %v345_v15 = vld [vmem:[%s1292_s11 + $0x2] sm:$0x1]  ;;  %v1318_v16 = vunpack.c.l.bf16 %v343_v11 }
  0x3d   : > { %v1320_v17 = vstv %s338_s15  ;;  %vm471_vm2 = vcmask 1042434   ;;  %v481_v18 = vadd.f32 %v480_v7, %v479_v5  ;;  %v488_v19 = vadd.f32 %v487_v8, %v486_v6  ;;  %v346_v20 = vld [vmem:[%s1292_s11 + $0x3] sm:$0x1]  ;;  %s805_s8 = sshll.u32 %s1119_s0, 2  ;;  %s337_s19 = scalar_lea.vmem [#allocation15], %s801_s25 }
  0x3e   : > { %v1323_v21 = vunpack.c.l.bf16 %v344_v14  ;;  %v1325_v22 = vunpack.c.l.bf16 %v345_v15  ;;  %vm473_vm3 = vcmask 1043459   ;;  %v495_v23 = vadd.f32 %v494_v12, %v493_v9  ;;  %s628_s14 = scalar_lea.hbm %s1466_s5, %s805_s8  ;;  %s630_s13 = sshll.u32 %s337_s19, 4  ;;  %s631_s13 = int_to_ptr.vmem [resolvable:$true] %s630_s13 }
  0x3f   : > { %v502_v24 = vadd.f32 %v501_v13, %v500_v10  ;;  %v1327_v25 = vunpack.c.l.bf16 %v346_v20  ;;  %v518_v26 = vsel %vm380_vm0, %v1318_v16, 0.0  ;;  %v482_v27 = vrot.slane %v481_v18, 2  ;;  %v478_v59 = vld [vmem:[#allocation4] sm:$0xf]  ;;  %s632_s21 = sshll.u32 %s628_s14, 4  ;;  %s605_s20 = scalar_lea.sflag [#allocation16], %s1278_s12  ;;  %s633_s21 = int_to_ptr.hbm [resolvable:$true] %s632_s21 }
  0x40   : > { %v489_v28 = vrot.slane %v488_v19, 2  ;;  %v519_v29 = vrot.slane %v518_v26, 4  ;;  %v525_v30 = vsel %vm380_vm0, %v1323_v21, 0.0  ;;  %v496_v31 = vrot.slane %v495_v23, 2  ;;  %s1021_s28 = sshra.s32 %s633_s21, 4  ;;  %s1027_s2 = scalar_lea.hbm %s1466_s5, 24  ;;  %s1022_s28 = int_to_ptr.hbm [resolvable:$true] %s1021_s28 }
  0x41   : > { %v503_v32 = vrot.slane %v502_v24, 2  ;;  %v526_v33 = vrot.slane %v525_v30, 4  ;;  %v532_v34 = vsel %vm380_vm0, %v1325_v22, 0.0  ;;  %v483_v35 = vadd.f32 %v482_v27, %v481_v18  ;;  %s1023_s6 = scalar_lea.hbm %s1022_s28, 4  ;;  %p1028_p6 = scmp.lt.s32.totalorder %s1022_s28, %s1466_s5 }
  0x42   : > { %v490_v36 = vadd.f32 %v489_v28, %v488_v19  ;;  %v520_v37 = vadd.f32 %v519_v29, %v518_v26  ;;  %v533_v38 = vrot.slane %v532_v34, 4  ;;  %v497_v39 = vadd.f32 %v496_v31, %v495_v23  ;;  %v517_v26 = vld [vmem:[#allocation5] sm:$0xf]  ;;  %p1024_p3 = scmp.ne.s32.totalorder %s1022_s28, %s1023_s6  ;;  %p1029_p7 = scmp.lt.s32.totalorder %s1027_s2, %s1023_s6 }
  0x43   : > { %v504_v40 = vadd.f32 %v503_v32, %v502_v24  ;;  %v527_v41 = vadd.f32 %v526_v33, %v525_v30  ;;  %v539_v42 = vsel %vm380_vm0, %v1327_v25, 0.0  ;;  %v484_v43 = vrot.slane %v483_v35, 1  ;;  %v1356_v33 = vld [vmem:[%s1282_s10] sm:$0x3] }
  0x44   : > { %v491_v44 = vrot.slane %v490_v36, 1  ;;  %v521_v45 = vrot.slane %v520_v37, 2  ;;  %v534_v46 = vadd.f32 %v533_v38, %v532_v34  ;;  %v498_v47 = vrot.slane %v497_v39, 1  ;;  %v1359_v34 = vld [vmem:[%s1282_s10 + $0x2] sm:$0x3]  ;;  %p1025_p4 = pnand %p1024_p3, %p1223_p9  ;;  %p1030_p8 = por %p1029_p7, %p1028_p6 }
  0x45   : > { %v505_v48 = vrot.slane %v504_v40, 1  ;;  %v528_v49 = vrot.slane %v527_v41, 2  ;;  %v540_v50 = vrot.slane %v539_v42, 4  ;;  %v485_v51 = vadd.f32 %v484_v43, %v483_v35 }
  0x46   : > { %v492_v52 = vadd.f32 %v491_v44, %v490_v36  ;;  %v522_v53 = vadd.f32 %v521_v45, %v520_v37  ;;  %v535_v54 = vrot.slane %v534_v46, 2  ;;  %v499_v55 = vadd.f32 %v498_v47, %v497_v39  ;;  %v1362_v36 = vld [vmem:[%s1282_s10 + $0x4] sm:$0x3]  ;;  %p1026_p5 = pneg %p1025_p4 }
  0x47   : > { %v506_v56 = vadd.f32 %v505_v48, %v504_v40  ;;  %v529_v57 = vadd.f32 %v528_v49, %v527_v41  ;;  %v541_v58 = vadd.f32 %v540_v50, %v539_v42  ;;  %v433_v63 = vmul.f32 %v1299_v1, %v1318_v16  ;;  %v1369_v41 = vld [vmem:[%s1282_s10 + $0x6] sm:$0x3] }
  0x48   : > { %v511_v60 = vsel %vm469_vm1, %v492_v52, %v485_v51  ;;  %v523_v61 = vrot.slane %v522_v53, 1  ;;  %v536_v62 = vadd.f32 %v535_v54, %v534_v46  ;;  %v434_v7 = vmul.f32 %v1301_v2, %v1323_v21  ;;  %p1031_p10 = pnand %p1030_p8, %p1026_p5 }
  0x49   : > { %v512_v0 = vsel %vm471_vm2, %v499_v55, %v511_v60  ;;  %v530_v5 = vrot.slane %v529_v57, 1  ;;  %v542_v6 = vrot.slane %v541_v58, 2  ;;  %vm567_vm4 = vcmask 1043456  }
  0x4a   : > { %v513_v8 = vsel %vm473_vm3, %v506_v56, %v512_v0  ;;  %v524_v9 = vadd.f32 %v523_v61, %v522_v53  ;;  %v537_v10 = vrot.slane %v536_v62, 1  ;;  %v435_v11 = vmul.f32 %v1303_v3, %v1325_v22 }
  0x4b   : > { %v515_v12 = vadd.f32 %v513_v8, %v478_v59  ;;  %v531_v13 = vadd.f32 %v530_v5, %v529_v57  ;;  %v543_v14 = vadd.f32 %v542_v6, %v541_v58  ;;  %v436_v1 = vmul.f32 %v1305_v4, %v1327_v25 }
  0x4c   : > { %v538_v15 = vadd.f32 %v537_v10, %v536_v62  ;;  %v437_v18 = vsel %vm380_vm0, %v433_v63, 0.0  ;;  %v444_v19 = vsel %vm380_vm0, %v434_v7, 0.0  ;;  %v451_v2 = vsel %vm380_vm0, %v435_v11, 0.0  ;;  %v432_v7 = vld [vmem:[#allocation3] sm:$0xf] }
  0x4d   : > { %516 = vst [vmem:[#allocation4] sm:$0xf] %v515_v12  ;;  %v544_v20 = vrot.slane %v543_v14, 1  ;;  %v550_v3 = vsel %vm469_vm1, %v531_v13, %v524_v9  ;;  %v438_v23 = vrot.slane %v437_v18, 4  ;;  %v445_v24 = vrot.slane %v444_v19, 4 }
  0x4e   : > { %v551_v27 = vsel %vm471_vm2, %v538_v15, %v550_v3  ;;  %v452_v4 = vrot.slane %v451_v2, 4  ;;  %v458_v28 = vsel %vm380_vm0, %v436_v1, 0.0  ;;  %vm364_vm5 = vcmp.gt.s32.totalorder %v1320_v17, 0 }
  0x4f   : > { %v545_v29 = vadd.f32 %v544_v20, %v543_v14  ;;  %v439_v30 = vadd.f32 %v438_v23, %v437_v18  ;;  %v446_v31 = vadd.f32 %v445_v24, %v444_v19  ;;  %v459_v32 = vrot.slane %v458_v28, 4 }
  0x50   : > { %v453_v35 = vadd.f32 %v452_v4, %v451_v2  ;;  %vm365_vm6 = vcmp.gt.s32.totalorder %v1320_v17, 1  ;;  %vm366_vm7 = vcmp.gt.s32.totalorder %v1320_v17, 2  ;;  %vm367_vm8 = vcmp.gt.s32.totalorder %v1320_v17, 3 }
  0x51   : > { %v552_v37 = vsel %vm473_vm3, %v545_v29, %v551_v27  ;;  %v440_v38 = vrot.slane %v439_v30, 2  ;;  %v447_v39 = vrot.slane %v446_v31, 2  ;;  %v460_v40 = vadd.f32 %v459_v32, %v458_v28 }
  0x52   : > { %v554_v42 = vadd.f32 %v552_v37, %v517_v26  ;;  %v454_v43 = vrot.slane %v453_v35, 2  ;;  %v376_v44 = vsel %vm364_vm5, %v1356_v33, -1e+30  ;;  %v377_v45 = vsel %vm365_vm6, %v1359_v34, -1e+30 }
  0x53   : > { %v441_v46 = vadd.f32 %v440_v38, %v439_v30  ;;  %v448_v47 = vadd.f32 %v447_v39, %v446_v31  ;;  %v461_v48 = vrot.slane %v460_v40, 2  ;;  %v378_v49 = vsel %vm366_vm7, %v1362_v36, -1e+30 }
  0x54   : > { %v571_v50 = vld [vmem:[#allocation4] sm:$0xf]  ;;  %555 = vst [vmem:[#allocation5] sm:$0xf] %v554_v42  ;;  %v455_v51 = vadd.f32 %v454_v43, %v453_v35  ;;  %v379_v52 = vsel %vm367_vm8, %v1369_v41, -1e+30  ;;  %v410_v30 = vmul.f32 %v1318_v16, %v1356_v33  ;;  %v411_v31 = vmul.f32 %v1323_v21, %v1359_v34 }
  0x55   : > { %v572_v53 = vsel %vm567_vm4, %v571_v50, 0.0  ;;  %v442_v54 = vrot.slane %v441_v46, 1  ;;  %v449_v55 = vrot.slane %v448_v47, 1  ;;  %v462_v56 = vadd.f32 %v461_v48, %v460_v40 }
  0x56   : > { %573 = vadd.xlane.f32.xlu0 %v572_v53  ;;  %v456_v57 = vrot.slane %v455_v51, 1  ;;  %v381_v58 = vsel %vm380_vm0, %v376_v44, -inf  ;;  %v382_v59 = vsel %vm380_vm0, %v377_v45, -inf  ;;  %v383_v60 = vsel %vm380_vm0, %v378_v49, -inf }
  0x57   : > { %v443_v61 = vadd.f32 %v442_v54, %v441_v46  ;;  %v450_v62 = vadd.f32 %v449_v55, %v448_v47  ;;  %v463_v63 = vrot.slane %v462_v56, 1  ;;  %v384_v0 = vsel %vm380_vm0, %v379_v52, -inf }
  0x58   : > { %v457_v17 = vadd.f32 %v456_v57, %v455_v51  ;;  %v385_v5 = vmax.f32 %v381_v58, %v382_v59  ;;  %v386_v6 = vmax.f32 %v383_v60, %v384_v0  ;;  %v412_v43 = vmul.f32 %v1325_v22, %v1362_v36  ;;  %v422_v57 = vld [vmem:[#allocation2] sm:$0x1] }
  0x59   : > { %v464_v8 = vadd.f32 %v463_v63, %v462_v56  ;;  %v470_v9 = vsel %vm469_vm1, %v450_v62, %v443_v61  ;;  %v415_v16 = vsel %vm380_vm0, %v411_v31, 0.0  ;;  %v413_v21 = vmul.f32 %v1327_v25, %v1369_v41 }
  0x5a   : > { %v472_v10 = vsel %vm471_vm2, %v457_v17, %v470_v9  ;;  %v387_v11 = vmax.f32 %v385_v5, %v386_v6  ;;  %v417_v34 = vsel %vm380_vm0, %v412_v43, 0.0  ;;  %vm560_vm9 = vcmask 1040384  }
  0x5b   : > { %v575_v12 = vld [vmem:[#allocation5] sm:$0xf]  ;;  %v474_v13 = vsel %vm473_vm3, %v464_v8, %v472_v10  ;;  %v419_v47 = vsel %vm380_vm0, %v413_v21, 0.0 }
  0x5c   : > { %v576_v14 = vsel %vm567_vm4, %v575_v12, 0.0  ;;  %v476_v1 = vadd.f32 %v474_v13, %v432_v7  ;;  %v388_v15 = vsub.f32 %v376_v44, %v387_v11  ;;  %v389_v18 = vsub.f32 %v377_v45, %v387_v11 }
  0x5d   : > { %v390_v19 = vsub.f32 %v378_v49, %v387_v11  ;;  %v391_v2 = vsub.f32 %v379_v52, %v387_v11  ;;  %v414_v44 = vsel %vm380_vm0, %v410_v30, 0.0 }
  0x5e   : > { %577 = vadd.xlane.f32.xlu0 %v576_v14  ;;  %477 = vst [vmem:[#allocation3] sm:$0xf] %v476_v1  ;;  %v392_v20 = vmul.f32 1.442695, %v388_v15  ;;  %v394_v3 = vmul.f32 1.442695, %v389_v18  ;;  %v416_v45 = vadd.f32 %v415_v16, %v414_v44 }
  0x5f   : > { %v396_v23 = vmul.f32 1.442695, %v390_v19  ;;  %v398_v24 = vmul.f32 1.442695, %v391_v2 }
  0x60   : > { %893 = vpow2.f32 %v392_v20  ;;  %v418_v46 = vadd.f32 %v417_v34, %v416_v45 }
  0x61   : > { %895 = vpow2.f32 %v394_v3 }
  0x62   : > { %897 = vpow2.f32 %v396_v23  ;;  %v420_v50 = vadd.f32 %v419_v47, %v418_v46 }
  0x63   : > { %899 = vpow2.f32 %v398_v24 }
  0x65   : > { %v566_v26 = vld [vmem:[#allocation3] sm:$0xf] }
  0x66   : > { %v894_v27 = vpop.eup %893  ;;  %v568_v4 = vsel %vm567_vm4, %v566_v26, 0.0 }
  0x67   : > { %v896_v28 = vpop.eup %895  ;;  %569 = vadd.xlane.f32.xlu1 %v568_v4  ;;  %v400_v29 = vsel %vm380_vm0, %v894_v27, 0.0 }
  0x68   : > { %v898_v32 = vpop.eup %897  ;;  %v401_v35 = vsel %vm380_vm0, %v896_v28, 0.0 }
  0x69   : > { %v900_v37 = vpop.eup %899  ;;  %v402_v38 = vadd.f32 %v401_v35, %v400_v29  ;;  %v403_v39 = vsel %vm380_vm0, %v898_v32, 0.0 }
  0x6a   : > { %v405_v40 = vsel %vm380_vm0, %v900_v37, 0.0 }
  0x6b   : > { %v404_v42 = vadd.f32 %v403_v39, %v402_v38 }
  0x6d   : > { %v406_v33 = vadd.f32 %v405_v40, %v404_v42 }
  0x6f   : > { %901 = vlog2.f32 %v406_v33 }
  0x75   : > { %v902_v48 = vpop.eup %901 }
  0x76   : > { %v408_v49 = vmul.f32 0.6931472, %v902_v48 }
  0x78   : > { %v409_v51 = vadd.f32 %v408_v49, %v387_v11 }
  0x7a   : > { %v421_v22 = vsub.f32 %v409_v51, %v420_v50 }
  0x7c   : > { %v423_v36 = vsel %vm380_vm0, %v421_v22, 0.0 }
  0x7d   : > { %v424_v52 = vrot.slane %v423_v36, 4 }
  0x7f   : > { %v425_v53 = vadd.f32 %v424_v52, %v423_v36 }
  0x81   : > { %v426_v54 = vrot.slane %v425_v53, 2 }
  0x83   : > { %v427_v55 = vadd.f32 %v426_v54, %v425_v53 }
  0x85   : > { %v428_v56 = vrot.slane %v427_v55, 1 }
  0x87   : > { %v429_v58 = vadd.f32 %v428_v56, %v427_v55 }
  0x89   : > { %v430_v25 = vadd.f32 %v429_v58, %v422_v57 }
  0x8b   : > { %431 = vst [vmem:[#allocation2] sm:$0x1] %v430_v25 }
  0x92   : > { %v559_v41 = vld [vmem:[#allocation2] sm:$0x1] }
  0x93   : > { %v561_v59 = vsel %vm560_vm9, %v559_v41, 0.0 }
  0x94   : > { %562 = vadd.xlane.f32.xlu1 %v561_v59 }
  0xc9   : > { %v574_v60 = vpop.xlane.xlu0 %573 }
  0xd1   : > { %v578_v61 = vpop.xlane.xlu0 %577 }
  0xd2   : > { %v581_v62 = vadd.f32 %v578_v61, %v574_v60 }
  0xd4   : > { %v582_v63 = vadd.f32 1.0, %v581_v62 }
  0xd6   : > { %903 = vrcp.f32 %v582_v63  ;;  %v594_v8 = vand.u32 2147483648, %v582_v63  ;;  %v592_v10 = vand.u32 2147483647, %v582_v63  ;;  %vm588_vm11 = vweird.f32 %v582_v63 }
  0xd8   : > { %v595_v13 = vor.u32 1.1754944e-38, %v594_v8  ;;  %vm593_vm13 = vcmp.eq.f32.partialorder %v592_v10, 8.507059e+37 }
  0xda   : > { %v570_v17 = vpop.xlane.xlu1 %569 }
  0xdb   : > { %v579_v7 = vmul.f32 2.0, %v570_v17 }
  0xdc   : > { %v904_v0 = vpop.eup %903 }
  0xdd   : > { %v584_v5 = vmul.f32 %v904_v0, %v582_v63  ;;  %vm589_vm10 = vweird.f32 %v904_v0  ;;  %v580_v12 = vadd.f32 1.0, %v579_v7 }
  0xde   : > { %vm590_vm12 = vmor %vm588_vm11, %vm589_vm10 }
  0xdf   : > { %v585_v6 = vsub.f32 1.0, %v584_v5 }
  0xe1   : > { %v586_v9 = vmul.f32 %v904_v0, %v585_v6 }
  0xe3   : > { %v587_v11 = vadd.f32 %v904_v0, %v586_v9 }
  0xe5   : > { %v591_v14 = vsel %vm590_vm12, %v904_v0, %v587_v11 }
  0xe6   : > { %v596_v1 = vsel %vm593_vm13, %v595_v13, %v591_v14 }
  0xe7   : > { %v597_v15 = vmul.f32 %v596_v1, %v580_v12 }
  0xe9   : > { %v598_v18 = vsub.f32 1.0, %v597_v15 }
  0xeb   : > { %599 = vst [vmem:[%s337_s19] sm:$0xf] %v598_v18 }
  0xec   : > { %1034 = shalt.err (!%p1031_p10)
}
  0xed   : > { %817 = dma.vmem_to_hbm [thread:$0]  (%p1223_p9), %s631_s13, 64, %s633_s21, %s605_s20  }
  0xee   : > { %s614_s29 = scalar_lea.hbm %s1465_s4, %s1119_s0  ;;  %s330_s11 = scalar_lea.vmem [#allocation14], %s1278_s12 }
  0xef   : > { %s616_s15 = sshll.u32 %s330_s11, 4  ;;  %s618_s27 = sshll.u32 %s614_s29, 4  ;;  %s617_s15 = int_to_ptr.vmem [resolvable:$true] %s616_s15  ;;  %s619_s27 = int_to_ptr.hbm [resolvable:$true] %s618_s27 }
  0xf0   : > { %s601_s8 = scalar_lea.sflag [#allocation10], %s1278_s12  ;;  %s1049_s30 = sshra.s32 %s619_s27, 4  ;;  %s1050_s30 = int_to_ptr.hbm [resolvable:$true] %s1049_s30 }
  0xf1   : > { %s1051_s16 = scalar_lea.hbm %s1050_s30, 1  ;;  %s1055_s0 = scalar_lea.hbm %s1465_s4, 6 }
  0xf2   : > { %p1052_p12 = scmp.ne.s32.totalorder %s1050_s30, %s1051_s16  ;;  %p1056_p1 = scmp.lt.s32.totalorder %s1050_s30, %s1465_s4 }
  0xf3   : > { %p1057_p2 = scmp.lt.s32.totalorder %s1055_s0, %s1051_s16 }
  0xf4   : > { %p1053_p13 = pnand %p1052_p12, %p1223_p9 }
  0xf5   : > { %p1058_p3 = por %p1057_p2, %p1056_p1 }
  0xf6   : > { %p1054_p0 = pneg %p1053_p13 }
  0xf8   : > { %p1059_p4 = pnand %p1058_p3, %p1054_p0 }
 0x107   : > { %v563_v19 = vpop.xlane.xlu1 %562 }
 0x108   : > { %v564_v2 = vmul.f32 0.00390625, %v563_v19 }
 0x10a   : > { %565 = vst [vmem:[%s330_s11] sm:$0x1] %v564_v2 }
 0x10b   : > { %1062 = shalt.err (!%p1059_p4)
}
 0x10c   : > { %816 = dma.vmem_to_hbm [thread:$0]  (%p1223_p9), %s617_s15, 16, %s619_s27, %s601_s8  }
 0x10d PF: > { %p838_p5 = scmp.ge.s32.totalorder %s1127_s26, 2  ;;  %s644_s20 = sand.u32 1, %s1107_s22  }
 0x10e   : > { %s645_s28 = scalar_lea.sflag [#allocation10], %s644_s20 }
 0x10f   : > { %p831_p6 = pnand %p838_p5, %p1230_p11 }
 0x111   : > { %p832_p7 = pneg %p831_p6 }
 0x113   : > { %1098 = dma.done.wait (%p832_p7), %s645_s28, 16  }
 0x114   : > { %1100 = vsyncadd (%p832_p7), %s645_s28, 4294967280  ;;  %s654_s6 = scalar_lea.sflag [#allocation16], %s644_s20 }
 0x115   : > { %1102 = dma.done.wait (%p832_p7), %s654_s6, 64  }
 0x116   : > { %1104 = vsyncadd (%p832_p7), %s654_s6, 4294967232  ;;  %s36_s26 = sadd.s32 1, %s1127_s26   ;;  %s1485_s9 = sld [smem:[#allocation22_spill]] }
 0x117   : > { %p33_p8 = scmp.ge.s32.totalorder %s36_s26, 8   ;;  %s1486_s24 = sld [smem:[#allocation25_spill]] }
 0x118   : > { %s1487_s0 = sld [smem:[#allocation23_spill]]  ;;  %s1489_s22 = smov %s1111_s23 }
 0x119   : > { %s1488_s25 = sld [smem:[#allocation24_spill]]  ;;  %35 = sbr.rel (!%p33_p8) target bundleno = 16 (0x10), region = 126 }
 0x11c   : > { %s1490_s23 = smov %s1485_s9 }
 0x11e   :  { %660 = vsyncpa [#allocation9], 1 }
 0x11f   :  { %662 = vsyncpa [#allocation9 + $0x1], 1 }
 0x120   :  { %663 = vsyncpa [#allocation12], 1 }
 0x121   :  { %665 = vsyncpa [#allocation12 + $0x1], 1 }
 0x122   :  { %666 = vsyncpa [#allocation10], 1 }
 0x123   :  { %668 = vsyncpa [#allocation10 + $0x1], 1 }
 0x124   :  { %669 = vsyncpa [#allocation16], 1 }
 0x125   :  { %671 = vsyncpa [#allocation16 + $0x1], 1 }

</bundles_post_ra>
